<compile_context>
chip_gen: v6e
topology: v6e:2x2x1
jax: 0.10.0
libtpu: 0.0.40
codegen_flags: <defaults>
</compile_context>

<pallas_src>
import functools

import jax
import jax.numpy as jnp
from jax.experimental import pallas as pl
from jax.experimental.pallas import tpu as pltpu


def _attention_kernel(x_hbm, w_ref, wout_ref, out_ref,
                      x_s, q_s, k_s, v_s, dma_sem,
                      *, heads, dim_head, dv, inner, n_valid, eps, tk,
                      fold_out, matmul_dtype):
    # x_hbm:    (B, C, Np) raw HBM ref (memory_space=ANY), DMA'd once per batch
    # w_ref:    (2*inner + heads*dv, C)  [scale*Wq ; Wk ; Wv or Wout@Wv], gamma folded
    # wout_ref: (C, inner)   only used when fold_out is False
    # out_ref:  (C, TQ)      output tile (lane-dense along the spatial axis)
    # x_s:      (C, Np)      VMEM copy of this batch element (also residual source)
    # q_s/k_s:  (heads, dim_head, Np) bf16 caches
    # v_s:      (heads, dv, Np)       bf16 cache (dv == C when Wout is folded)
    b = pl.program_id(0)
    qi = pl.program_id(1)
    C, Np = x_s.shape
    TQ = out_ref.shape[-1]

    # ---- once per batch element: fetch x, LayerNorm, fused projections -----
    @pl.when(qi == 0)
    def _():
        cp = pltpu.make_async_copy(x_hbm.at[b], x_s, dma_sem.at[0])
        cp.start()
        cp.wait()
        x = x_s[...].astype(jnp.float32)                         # (C, Np)
        mean = jnp.mean(x, axis=0, keepdims=True)                # per spatial pos
        var = jnp.mean((x - mean) ** 2, axis=0, keepdims=True)   # biased var
        xn = ((x - mean) * jax.lax.rsqrt(var + eps)).astype(matmul_dtype)
        w = w_ref[...]                                           # small weight slab
        # Three separate MXU dots -> no (3*inner, Np) f32 intermediate.
        q_s[...] = jnp.dot(w[:inner], xn, preferred_element_type=jnp.float32
                           ).reshape(heads, dim_head, Np).astype(matmul_dtype)
        k_s[...] = jnp.dot(w[inner:2 * inner], xn,
                           preferred_element_type=jnp.float32
                           ).reshape(heads, dim_head, Np).astype(matmul_dtype)
        v_s[...] = jnp.dot(w[2 * inner:], xn,
                           preferred_element_type=jnp.float32
                           ).reshape(heads, dv, Np).astype(matmul_dtype)

    # ---- per query tile: flash-style attention over key chunks -------------
    q0 = pl.multiple_of(qi * TQ, TQ)
    qh = q_s[:, :, pl.ds(q0, TQ)]                                # (h, d, TQ)
    n_chunks = Np // tk

    def chunk(kc, carry):
        m_prev, l_prev, acc_prev = carry      # (h,1,TQ), (h,1,TQ), (h,dv,TQ) f32
        k0 = kc * tk
        if not isinstance(kc, int):
            k0 = pl.multiple_of(k0, tk)
        kk = k_s[:, :, pl.ds(k0, tk)]                            # (h, d, TK)
        vv = v_s[:, :, pl.ds(k0, tk)]                            # (h, dv, TK)
        # Transposed scores: keys on sublanes, queries on lanes, so the
        # softmax stats are lane-major and rescaling acc needs no relayout.
        sim = jnp.einsum('hdk,hdq->hkq', kk, qh,
                         preferred_element_type=jnp.float32)     # (h, TK, TQ)
        if n_valid < Np:   # static: mask padded key positions
            key_idx = k0 + jax.lax.broadcasted_iota(jnp.int32, (1, tk, 1), 1)
            sim = jnp.where(key_idx < n_valid, sim, -1e30)
        m_new = jnp.maximum(m_prev, jnp.max(sim, axis=1, keepdims=True))
        p = jnp.exp(sim - m_new)                                 # (h, TK, TQ) f32
        alpha = jnp.exp(m_prev - m_new)                          # (h, 1, TQ)
        l_new = alpha * l_prev + jnp.sum(p, axis=1, keepdims=True)
        pv = jnp.einsum('hvk,hkq->hvq', vv, p.astype(matmul_dtype),
                        preferred_element_type=jnp.float32)      # (h, dv, TQ)
        return m_new, l_new, acc_prev * alpha + pv

    carry = (jnp.full((heads, 1, TQ), -1e30, jnp.float32),
             jnp.zeros((heads, 1, TQ), jnp.float32),
             jnp.zeros((heads, dv, TQ), jnp.float32))
    if n_chunks <= 8:     # static unroll for short loops (LLO visibility)
        for kc in range(n_chunks):
            carry = chunk(kc, carry)
    else:
        carry = jax.lax.fori_loop(0, n_chunks, chunk, carry)
    _, l_f, acc = carry

    inv_l = pl.reciprocal(l_f, approx=True)                      # (h, 1, TQ)
    out_scaled = acc * inv_l                                     # (h, dv, TQ)
    if fold_out:
        # Wout already folded into the value path -> just reduce over heads.
        o = jnp.sum(out_scaled, axis=0)                          # (C, TQ)
    else:
        o = jnp.dot(wout_ref[...],
                    out_scaled.reshape(inner, TQ).astype(matmul_dtype),
                    preferred_element_type=jnp.float32)          # (C, TQ)
    res = x_s[:, pl.ds(q0, TQ)].astype(jnp.float32)
    out_ref[...] = (o + res).astype(out_ref.dtype)


def _vmem_limit_bytes():
    """Generation-aware VMEM limit (leave headroom for compiler scratch)."""
    cap = None
    try:
        info = pltpu.get_tpu_info()
        cap = getattr(info, "vmem_capacity_bytes", None)
    except Exception:
        cap = None
    if not cap or cap <= 0:
        cap = 64 * 1024 * 1024   # conservative default: v7x per-TC VMEM
    return int(max(32 << 20, min(cap - (16 << 20), 100 << 20)))


def _pick_tiles(n_pad, heads, dim_head, dv, c, inner, x_itemsize, out_itemsize,
                vmem_limit):
    """Largest (TQ, TK) whose resident + per-tile live set fits the budget."""
    w_rows = 2 * inner + heads * dv
    fixed = (c * n_pad * x_itemsize               # x slab scratch (single copy)
             + 2 * heads * dim_head * n_pad * 2   # Q + K caches (bf16)
             + heads * dv * n_pad * 2             # V / Wout@V cache (bf16)
             + 2 * w_rows * c * 2                 # fused weight (double-buffered)
             + 2 * c * inner * 2)                 # wout (double-buffered)
    avail = vmem_limit - fixed - (4 << 20)        # misc compiler headroom

    def live(tq, tk):
        return (2 * heads * tq * tk * 4           # sim + p (f32)
                + heads * dv * tq * 4             # acc (f32)
                + heads * dim_head * tq * 2       # q tile (bf16)
                + heads * (dim_head + dv) * tk * 2   # k/v chunk slices
                + 2 * c * tq * out_itemsize       # out tile (double-buffered)
                + 4 * heads * tq * 4)             # m/l/alpha stats

    tq_cands = [t for t in (1024, 512, 256, 128) if t <= n_pad and n_pad % t == 0]
    tk_cands = [t for t in (512, 256, 128) if t <= n_pad and n_pad % t == 0]
    if not tq_cands:
        tq_cands = [n_pad]
    if not tk_cands:
        tk_cands = [n_pad]
    for tq in tq_cands:
        for tk in tk_cands:
            if live(tq, tk) <= avail:
                return tq, tk
    # TODO(synk): for very large N the K/V caches themselves exceed VMEM; they
    # should then stream from HBM via a key grid axis instead of VMEM scratch.
    return tq_cands[-1], tk_cands[-1]


def attention_forward(x_nchw, gamma, wqkv, wout, *, heads, dim_head,
                      matmul_dtype=jnp.bfloat16):
    """x_nchw: (B,C,H,W); gamma: (C,); wqkv: (3*inner, C); wout: (C, inner)."""
    B, C, H, W = x_nchw.shape
    N = H * W
    inner = heads * dim_head
    scale = dim_head ** (-0.5)
    # Matches the PyTorch LayerNorm: eps = 1e-5 for f32 input, 1e-3 otherwise.
    eps = 1e-5 if x_nchw.dtype == jnp.float32 else 1e-3

    assert dim_head % 8 == 0 and inner % 8 == 0, (
        "dim_head / inner must be sublane-aligned (multiples of 8)")

    # Channels-first flattened layout (free reshape); pad the spatial axis to
    # a multiple of 128 (padded keys are masked, padded query cols sliced off).
    n_pad = max(128, ((N + 127) // 128) * 128)
    x = x_nchw.reshape(B, C, N)
    if n_pad != N:
        x = jnp.pad(x, ((0, 0), (0, 0), (0, n_pad - N)))

    # One-off weight prep: fold the attention scale into Wq, fold Wout into Wv
    # per head when it shrinks the value path (C <= dim_head), and fold the
    # LayerNorm gamma into every column (projections contract over channels).
    wq = wqkv[:inner] * scale
    wk = wqkv[inner:2 * inner]
    wv = wqkv[2 * inner:]
    fold_out = C <= dim_head
    if fold_out:
        wout_h = wout.reshape(C, heads, dim_head)            # (C, h, d)
        wv_h = wv.reshape(heads, dim_head, C)                # (h, d, C)
        w_last = jnp.einsum('chd,hdk->hck', wout_h, wv_h).reshape(heads * C, C)
        dv = C
    else:
        w_last = wv
        dv = dim_head
    w_rows = 2 * inner + heads * dv
    w_all = (jnp.concatenate([wq, wk, w_last], axis=0)
             * gamma.reshape(1, C)).astype(matmul_dtype)
    wout_eff = wout.astype(matmul_dtype)

    vmem_limit = _vmem_limit_bytes()
    TQ, TK = _pick_tiles(n_pad, heads, dim_head, dv, C, inner,
                         x.dtype.itemsize, x.dtype.itemsize, vmem_limit)
    grid = (B, n_pad // TQ)

    kernel = functools.partial(
        _attention_kernel, heads=heads, dim_head=dim_head, dv=dv, inner=inner,
        n_valid=N, eps=eps, tk=TK, fold_out=fold_out, matmul_dtype=matmul_dtype)

    att_flops = 2 * B * heads * n_pad * n_pad * (dim_head + dv)
    proj_flops = 2 * B * n_pad * C * (2 * inner + heads * dv)
    if not fold_out:
        proj_flops += 2 * B * n_pad * inner * C
    cost = pl.CostEstimate(
        flops=int(att_flops + proj_flops),
        transcendentals=int(B * heads * n_pad * n_pad),
        bytes_accessed=int(2 * x.size * x.dtype.itemsize
                           + w_all.size * 2 + wout_eff.size * 2))

    out = pl.pallas_call(
        kernel,
        out_shape=jax.ShapeDtypeStruct((B, C, n_pad), x.dtype),
        grid=grid,
        in_specs=[
            pl.BlockSpec(memory_space=pl.ANY),                      # x (HBM)
            pl.BlockSpec((w_rows, C), lambda b, qi: (0, 0)),        # fused W
            pl.BlockSpec((C, inner), lambda b, qi: (0, 0)),         # Wout
        ],
        out_specs=pl.BlockSpec((None, C, TQ), lambda b, qi: (b, 0, qi)),
        scratch_shapes=[
            pltpu.VMEM((C, n_pad), x.dtype),                        # x slab
            pltpu.VMEM((heads, dim_head, n_pad), matmul_dtype),     # Q cache
            pltpu.VMEM((heads, dim_head, n_pad), matmul_dtype),     # K cache
            pltpu.VMEM((heads, dv, n_pad), matmul_dtype),           # V / Wout@V
            pltpu.SemaphoreType.DMA((1,)),                          # x slab DMA
        ],
        compiler_params=pltpu.CompilerParams(
            # Batch axis is megacore-parallel; the query-tile axis reuses the
            # per-batch caches so it stays sequential ("arbitrary").
            dimension_semantics=("parallel", "arbitrary"),
            vmem_limit_bytes=vmem_limit,
        ),
        cost_estimate=cost,
    )(x, w_all, wout_eff)

    if n_pad != N:
        out = out[:, :, :N]
    return out.reshape(B, C, H, W)


def _reference(x_nchw, gamma, wqkv, wout, *, heads, dim_head):
    # Pure-JAX f32 reference mirroring the PyTorch forward.
    B, C, H, W = x_nchw.shape
    N = H * W
    inner = heads * dim_head
    scale = dim_head ** (-0.5)
    x = jnp.transpose(x_nchw.reshape(B, C, N), (0, 2, 1))        # (B, N, C)
    mean = jnp.mean(x, axis=-1, keepdims=True)
    var = jnp.mean((x - mean) ** 2, axis=-1, keepdims=True)
    xn = (x - mean) / jnp.sqrt(var + 1e-5) * gamma.reshape(1, 1, C)
    qkv = jnp.einsum('bnc,oc->bno', xn, wqkv)                    # (B, N, 3*inner)
    q, k, v = jnp.split(qkv, 3, axis=-1)

    def to_heads(t):
        return jnp.transpose(t.reshape(B, N, heads, dim_head), (0, 2, 1, 3))

    q, k, v = map(to_heads, (q, k, v))
    q = q * scale
    sim = jnp.einsum('bhid,bhjd->bhij', q, k)
    attn = jax.nn.softmax(sim, axis=-1)
    o = jnp.einsum('bhij,bhjd->bhid', attn, v)                   # (B, h, N, d)
    o = jnp.transpose(o, (0, 2, 1, 3)).reshape(B, N, inner)      # head-major
    o = jnp.einsum('bni,ci->bnc', o, wout)
    y = o + x
    return jnp.transpose(y, (0, 2, 1)).reshape(B, C, H, W)


if __name__ == "__main__":
    key = jax.random.PRNGKey(0)

    def run_case(B, C, H, W, heads, dim_head, k):
        inner = heads * dim_head
        kx, kg, kq, ko = jax.random.split(k, 4)
        x = jax.random.normal(kx, (B, C, H, W), dtype=jnp.float32)
        gamma = 1.0 + 0.1 * jax.random.normal(kg, (C,), dtype=jnp.float32)
        wqkv = jax.random.normal(kq, (3 * inner, C), dtype=jnp.float32) * 0.1
        wout = jax.random.normal(ko, (C, inner), dtype=jnp.float32) * 0.1
        y = attention_forward(x, gamma, wqkv, wout,
                              heads=heads, dim_head=dim_head)
        y = jax.block_until_ready(y)
        y_ref = _reference(x, gamma, wqkv, wout, heads=heads, dim_head=dim_head)
        err = float(jnp.max(jnp.abs(y - y_ref)))
        assert jnp.allclose(y, y_ref, atol=5e-2, rtol=5e-2), (
            f"mismatch (B={B},C={C},H={H},W={W},heads={heads},d={dim_head}): "
            f"max abs diff = {err}")

    k1, k2 = jax.random.split(key)
    # Folded Wout@V path (C <= dim_head) with spatial padding + key masking.
    run_case(2, 8, 8, 8, 2, 16, k1)
    # Standard path (C > dim_head), no padding (N = 256).
    run_case(1, 32, 16, 16, 2, 16, k2)

    print("KERNEL_OK")
</pallas_src>

<mosaic_0001>
module attributes {stable_mosaic.version = 11 : i64} {
  func.func @_attention_kernel(%arg0: i32, %arg1: i32, %arg2: memref<2x8x128xf32, #tpu.memory_space<any>>, %arg3: memref<80x8xbf16, #tpu.memory_space<vmem>>, %arg4: memref<8x32xbf16, #tpu.memory_space<vmem>>, %arg5: memref<1x8x128xf32, #tpu.memory_space<vmem>>, %arg6: memref<8x128xf32, #tpu.memory_space<vmem>>, %arg7: memref<2x16x128xbf16, #tpu.memory_space<vmem>>, %arg8: memref<2x16x128xbf16, #tpu.memory_space<vmem>>, %arg9: memref<2x8x128xbf16, #tpu.memory_space<vmem>>, %arg10: memref<1x!tpu.dma_semaphore, #tpu.memory_space<semaphore_mem>>) attributes {dimension_semantics = [#tpu.dimension_semantics<parallel>, #tpu.dimension_semantics<arbitrary>], iteration_bounds = array<i64: 2, 1>, scalar_prefetch = 0 : i64, scratch_operands = 5 : i64, tpu.core_type = #tpu.core_type<tc>, window_params = [{}, {pipeline_mode = #tpu.pipeline_mode<synchronous>, transform_indices = @transform_1, window_bounds = array<i64: 80, 8>}, {pipeline_mode = #tpu.pipeline_mode<synchronous>, transform_indices = @transform_2, window_bounds = array<i64: 8, 32>}, {transform_indices = @transform_3, window_bounds = array<i64: 1, 8, 128>}]} {
    %c0_i32 = arith.constant 0 : i32
    %0 = arith.cmpi eq, %arg1, %c0_i32 : i32
    %1 = arith.extui %0 : i1 to i32
    %c0_i32_0 = arith.constant 0 : i32
    %2 = arith.cmpi ne, %1, %c0_i32_0 : i32
    scf.if %2 {
      %c0_i32_21 = arith.constant 0 : i32
      %c0_i32_22 = arith.constant 0 : i32
      %c0_i32_23 = arith.constant 0 : i32
      %49 = tpu.memref_slice %arg2[%arg0, %c0_i32_22, %c0_i32_23] : memref<2x8x128xf32, #tpu.memory_space<any>> -> memref<1x8x128xf32, #tpu.memory_space<any>>
      %50 = tpu.memref_squeeze %49 : memref<1x8x128xf32, #tpu.memory_space<any>> -> memref<8x128xf32, #tpu.memory_space<any>>
      %51 = tpu.memref_slice %arg10[%c0_i32_21] : memref<1x!tpu.dma_semaphore, #tpu.memory_space<semaphore_mem>> -> memref<1x!tpu.dma_semaphore, #tpu.memory_space<semaphore_mem>>
      %52 = tpu.memref_squeeze %51 : memref<1x!tpu.dma_semaphore, #tpu.memory_space<semaphore_mem>> -> memref<!tpu.dma_semaphore, #tpu.memory_space<semaphore_mem>>
      tpu.enqueue_dma source(%50 : memref<8x128xf32, #tpu.memory_space<any>>) target(%arg6 : memref<8x128xf32, #tpu.memory_space<vmem>>) target_semaphore(%52 : memref<!tpu.dma_semaphore, #tpu.memory_space<semaphore_mem>>)
      %c0_i32_24 = arith.constant 0 : i32
      %c0_i32_25 = arith.constant 0 : i32
      %c0_i32_26 = arith.constant 0 : i32
      %53 = tpu.memref_slice %arg2[%arg0, %c0_i32_25, %c0_i32_26] : memref<2x8x128xf32, #tpu.memory_space<any>> -> memref<1x8x128xf32, #tpu.memory_space<any>>
      %54 = tpu.memref_squeeze %53 : memref<1x8x128xf32, #tpu.memory_space<any>> -> memref<8x128xf32, #tpu.memory_space<any>>
      %55 = tpu.memref_slice %arg10[%c0_i32_24] : memref<1x!tpu.dma_semaphore, #tpu.memory_space<semaphore_mem>> -> memref<1x!tpu.dma_semaphore, #tpu.memory_space<semaphore_mem>>
      %56 = tpu.memref_squeeze %55 : memref<1x!tpu.dma_semaphore, #tpu.memory_space<semaphore_mem>> -> memref<!tpu.dma_semaphore, #tpu.memory_space<semaphore_mem>>
      tpu.wait_dma2 semaphore(%56 : memref<!tpu.dma_semaphore, #tpu.memory_space<semaphore_mem>>) src(%54 : memref<8x128xf32, #tpu.memory_space<any>>) dst(%arg6 : memref<8x128xf32, #tpu.memory_space<vmem>>)
      %c0_27 = arith.constant 0 : index
      %c0_28 = arith.constant 0 : index
      %57 = vector.load %arg6[%c0_27, %c0_28] : memref<8x128xf32, #tpu.memory_space<vmem>>, vector<8x128xf32>
      %cst_29 = arith.constant dense<0.000000e+00> : vector<128xf32>
      %58 = vector.multi_reduction <add>, %57, %cst_29 [0] : vector<8x128xf32> to vector<128xf32>
      %59 = vector.shape_cast %58 : vector<128xf32> to vector<1x128xf32>
      %cst_30 = arith.constant 8.000000e+00 : f32
      %60 = vector.broadcast %cst_30 : f32 to vector<1x128xf32>
      %61 = arith.divf %59, %60 : vector<1x128xf32>
      %62 = vector.broadcast %61 : vector<1x128xf32> to vector<8x128xf32>
      %63 = arith.subf %57, %62 : vector<8x128xf32>
      %64 = arith.mulf %63, %63 : vector<8x128xf32>
      %cst_31 = arith.constant dense<0.000000e+00> : vector<128xf32>
      %65 = vector.multi_reduction <add>, %64, %cst_31 [0] : vector<8x128xf32> to vector<128xf32>
      %66 = vector.shape_cast %65 : vector<128xf32> to vector<1x128xf32>
      %cst_32 = arith.constant 8.000000e+00 : f32
      %67 = vector.broadcast %cst_32 : f32 to vector<1x128xf32>
      %68 = arith.divf %66, %67 : vector<1x128xf32>
      %69 = vector.broadcast %61 : vector<1x128xf32> to vector<8x128xf32>
      %70 = arith.subf %57, %69 : vector<8x128xf32>
      %cst_33 = arith.constant 9.99999974E-6 : f32
      %71 = vector.broadcast %cst_33 : f32 to vector<1x128xf32>
      %72 = arith.addf %68, %71 : vector<1x128xf32>
      %73 = math.rsqrt %72 : vector<1x128xf32>
      %74 = vector.broadcast %73 : vector<1x128xf32> to vector<8x128xf32>
      %75 = arith.mulf %70, %74 : vector<8x128xf32>
      %76 = arith.truncf %75 : vector<8x128xf32> to vector<8x128xbf16>
      %c0_34 = arith.constant 0 : index
      %c0_35 = arith.constant 0 : index
      %77 = vector.load %arg3[%c0_34, %c0_35] : memref<80x8xbf16, #tpu.memory_space<vmem>>, vector<80x8xbf16>
      %78 = vector.extract_strided_slice %77 {offsets = [0, 0], sizes = [32, 8], strides = [1, 1]} : vector<80x8xbf16> to vector<32x8xbf16>
      %cst_36 = arith.constant dense<0.000000e+00> : vector<32x128xf32>
      %79 = tpu.matmul %78, %76, %cst_36 {dimension_numbers = #tpu.dot_dimension_numbers<[1], [0], [0], [1], [0, 0, 1, 1], [], []>} : vector<32x8xbf16>, vector<8x128xbf16>, vector<32x128xf32> -> vector<32x128xf32>
      %80 = vector.shape_cast %79 : vector<32x128xf32> to vector<2x16x128xf32>
      %81 = arith.truncf %80 : vector<2x16x128xf32> to vector<2x16x128xbf16>
      %c0_37 = arith.constant 0 : index
      %c0_38 = arith.constant 0 : index
      %c0_39 = arith.constant 0 : index
      %82 = vector.load %arg7[%c0_37, %c0_38, %c0_39] : memref<2x16x128xbf16, #tpu.memory_space<vmem>>, vector<2x16x128xbf16>
      tpu.vector_store %arg7[%c0_37, %c0_38, %c0_39], %81 {strides = array<i32>} : memref<2x16x128xbf16, #tpu.memory_space<vmem>>, vector<2x16x128xbf16>,
      %83 = vector.extract_strided_slice %77 {offsets = [32, 0], sizes = [32, 8], strides = [1, 1]} : vector<80x8xbf16> to vector<32x8xbf16>
      %cst_40 = arith.constant dense<0.000000e+00> : vector<32x128xf32>
      %84 = tpu.matmul %83, %76, %cst_40 {dimension_numbers = #tpu.dot_dimension_numbers<[1], [0], [0], [1], [0, 0, 1, 1], [], []>} : vector<32x8xbf16>, vector<8x128xbf16>, vector<32x128xf32> -> vector<32x128xf32>
      %85 = vector.shape_cast %84 : vector<32x128xf32> to vector<2x16x128xf32>
      %86 = arith.truncf %85 : vector<2x16x128xf32> to vector<2x16x128xbf16>
      %c0_41 = arith.constant 0 : index
      %c0_42 = arith.constant 0 : index
      %c0_43 = arith.constant 0 : index
      %87 = vector.load %arg8[%c0_41, %c0_42, %c0_43] : memref<2x16x128xbf16, #tpu.memory_space<vmem>>, vector<2x16x128xbf16>
      tpu.vector_store %arg8[%c0_41, %c0_42, %c0_43], %86 {strides = array<i32>} : memref<2x16x128xbf16, #tpu.memory_space<vmem>>, vector<2x16x128xbf16>,
      %88 = vector.extract_strided_slice %77 {offsets = [64, 0], sizes = [16, 8], strides = [1, 1]} : vector<80x8xbf16> to vector<16x8xbf16>
      %cst_44 = arith.constant dense<0.000000e+00> : vector<16x128xf32>
      %89 = tpu.matmul %88, %76, %cst_44 {dimension_numbers = #tpu.dot_dimension_numbers<[1], [0], [0], [1], [0, 0, 1, 1], [], []>} : vector<16x8xbf16>, vector<8x128xbf16>, vector<16x128xf32> -> vector<16x128xf32>
      %90 = vector.shape_cast %89 : vector<16x128xf32> to vector<2x8x128xf32>
      %91 = arith.truncf %90 : vector<2x8x128xf32> to vector<2x8x128xbf16>
      %c0_45 = arith.constant 0 : index
      %c0_46 = arith.constant 0 : index
      %c0_47 = arith.constant 0 : index
      %92 = vector.load %arg9[%c0_45, %c0_46, %c0_47] : memref<2x8x128xbf16, #tpu.memory_space<vmem>>, vector<2x8x128xbf16>
      tpu.vector_store %arg9[%c0_45, %c0_46, %c0_47], %91 {strides = array<i32>} : memref<2x8x128xbf16, #tpu.memory_space<vmem>>, vector<2x8x128xbf16>,
    } else {
    }
    %c128_i32 = arith.constant 128 : i32
    %3 = arith.muli %arg1, %c128_i32 : i32
    %4 = tpu.assume_multiple %3, 128 : i32
    %c0 = arith.constant 0 : index
    %c0_1 = arith.constant 0 : index
    %5 = arith.index_cast %4 : i32 to index
    %6 = vector.load %arg7[%c0, %c0_1, %5] : memref<2x16x128xbf16, #tpu.memory_space<vmem>>, vector<2x16x128xbf16>
    %cst = arith.constant -1.000000e+30 : f32
    %7 = vector.broadcast %cst : f32 to vector<2x1x128xf32>
    %cst_2 = arith.constant 0.000000e+00 : f32
    %8 = vector.broadcast %cst_2 : f32 to vector<2x1x128xf32>
    %cst_3 = arith.constant 0.000000e+00 : f32
    %9 = vector.broadcast %cst_3 : f32 to vector<2x8x128xf32>
    %c0_4 = arith.constant 0 : index
    %c0_5 = arith.constant 0 : index
    %c0_6 = arith.constant 0 : index
    %10 = vector.load %arg8[%c0_4, %c0_5, %c0_6] : memref<2x16x128xbf16, #tpu.memory_space<vmem>>, vector<2x16x128xbf16>
    %c0_7 = arith.constant 0 : index
    %c0_8 = arith.constant 0 : index
    %c0_9 = arith.constant 0 : index
    %11 = vector.load %arg9[%c0_7, %c0_8, %c0_9] : memref<2x8x128xbf16, #tpu.memory_space<vmem>>, vector<2x8x128xbf16>
    "tpu.trace_start"() <{level = 10 : i32, message = "hdk,hdq->hkq"}> : () -> ()
    %cst_10 = arith.constant dense<0.000000e+00> : vector<2x128x128xf32>
    %12 = tpu.matmul %10, %6, %cst_10 {dimension_numbers = #tpu.dot_dimension_numbers<[1], [1], [2], [2], [0, 0, 0, 2, 1, 2], [0], [0]>} : vector<2x16x128xbf16>, vector<2x16x128xbf16>, vector<2x128x128xf32> -> vector<2x128x128xf32>
    "tpu.trace_stop"() : () -> ()
    %13 = tpu.iota {dimensions = array<i32: 1>} : vector<1x128x1xi32>
    %c0_i32_11 = arith.constant 0 : i32
    %14 = vector.broadcast %c0_i32_11 : i32 to vector<1x128x1xi32>
    %15 = arith.addi %14, %13 : vector<1x128x1xi32>
    %c64_i32 = arith.constant 64 : i32
    %16 = vector.broadcast %c64_i32 : i32 to vector<1x128x1xi32>
    %17 = arith.cmpi slt, %15, %16 : vector<1x128x1xi32>
    %cst_12 = arith.constant -1.000000e+30 : f32
    %18 = vector.shape_cast %17 : vector<1x128x1xi1> to vector<1x128x1xi1>
    %19 = vector.broadcast %18 : vector<1x128x1xi1> to vector<2x128x128xi1>
    %20 = vector.broadcast %cst_12 : f32 to vector<2x128x128xf32>
    %21 = arith.select %19, %12, %20 : vector<2x128x128xi1>, vector<2x128x128xf32>
    %cst_13 = arith.constant dense<0xFF800000> : vector<2x128xf32>
    %22 = vector.multi_reduction <maximumf>, %21, %cst_13 [1] : vector<2x128x128xf32> to vector<2x128xf32>
    %23 = vector.shape_cast %22 : vector<2x128xf32> to vector<2x1x128xf32>
    %24 = arith.maximumf %7, %23 : vector<2x1x128xf32>
    %25 = vector.broadcast %24 : vector<2x1x128xf32> to vector<2x128x128xf32>
    %26 = arith.subf %21, %25 : vector<2x128x128xf32>
    %27 = math.exp %26 : vector<2x128x128xf32>
    %28 = arith.subf %7, %24 : vector<2x1x128xf32>
    %29 = math.exp %28 : vector<2x1x128xf32>
    %30 = arith.mulf %29, %8 : vector<2x1x128xf32>
    %cst_14 = arith.constant dense<0.000000e+00> : vector<2x128xf32>
    %31 = vector.multi_reduction <add>, %27, %cst_14 [1] : vector<2x128x128xf32> to vector<2x128xf32>
    %32 = vector.shape_cast %31 : vector<2x128xf32> to vector<2x1x128xf32>
    %33 = arith.addf %30, %32 : vector<2x1x128xf32>
    %34 = arith.truncf %27 : vector<2x128x128xf32> to vector<2x128x128xbf16>
    "tpu.trace_start"() <{level = 10 : i32, message = "hvk,hkq->hvq"}> : () -> ()
    %cst_15 = arith.constant dense<0.000000e+00> : vector<2x8x128xf32>
    %35 = tpu.matmul %11, %34, %cst_15 {dimension_numbers = #tpu.dot_dimension_numbers<[2], [1], [1], [2], [0, 0, 0, 1, 1, 2], [0], [0]>} : vector<2x8x128xbf16>, vector<2x128x128xbf16>, vector<2x8x128xf32> -> vector<2x8x128xf32>
    "tpu.trace_stop"() : () -> ()
    %36 = vector.broadcast %29 : vector<2x1x128xf32> to vector<2x8x128xf32>
    %37 = arith.mulf %9, %36 : vector<2x8x128xf32>
    %38 = arith.addf %37, %35 : vector<2x8x128xf32>
    %39 = tpu.reciprocal %33 {approx = true} : vector<2x1x128xf32> -> vector<2x1x128xf32>
    %40 = vector.broadcast %39 : vector<2x1x128xf32> to vector<2x8x128xf32>
    %41 = arith.mulf %38, %40 : vector<2x8x128xf32>
    %cst_16 = arith.constant dense<0.000000e+00> : vector<8x128xf32>
    %42 = vector.multi_reduction <add>, %41, %cst_16 [0] : vector<2x8x128xf32> to vector<8x128xf32>
    %c0_17 = arith.constant 0 : index
    %43 = arith.index_cast %4 : i32 to index
    %44 = vector.load %arg6[%c0_17, %43] : memref<8x128xf32, #tpu.memory_space<vmem>>, vector<8x128xf32>
    %45 = arith.addf %42, %44 : vector<8x128xf32>
    %c0_18 = arith.constant 0 : index
    %c0_19 = arith.constant 0 : index
    %c0_20 = arith.constant 0 : index
    %46 = vector.load %arg5[%c0_18, %c0_19, %c0_20] : memref<1x8x128xf32, #tpu.memory_space<vmem>>, vector<1x8x128xf32>
    %47 = vector.shape_cast %46 : vector<1x8x128xf32> to vector<8x128xf32>
    %48 = vector.shape_cast %45 : vector<8x128xf32> to vector<1x8x128xf32>
    tpu.vector_store %arg5[%c0_18, %c0_19, %c0_20], %48 {strides = array<i32>} : memref<1x8x128xf32, #tpu.memory_space<vmem>>, vector<1x8x128xf32>,
    return
  }
  func.func @transform_1(%arg0: i32, %arg1: i32) -> (i32, i32) {
    %c0_i32 = arith.constant 0 : i32
    %c0_i32_0 = arith.constant 0 : i32
    %c0_i32_1 = arith.constant 0 : i32
    return %c0_i32, %c0_i32_0 : i32, i32
  }
  func.func @transform_2(%arg0: i32, %arg1: i32) -> (i32, i32) {
    %c0_i32 = arith.constant 0 : i32
    %c0_i32_0 = arith.constant 0 : i32
    %c0_i32_1 = arith.constant 0 : i32
    return %c0_i32, %c0_i32_0 : i32, i32
  }
  func.func @transform_3(%arg0: i32, %arg1: i32) -> (i32, i32, i32) {
    %c0_i32 = arith.constant 0 : i32
    %c0_i32_0 = arith.constant 0 : i32
    return %arg0, %c0_i32, %arg1 : i32, i32, i32
  }
}

</mosaic_0001>

<bundles_post_ra>
// kernel: tpu_custom_call.1
= control target key start
LH: loop header
LB: loop body
LE: loop exit
PB: predicated region body
PF: predicated region fallthrough
CT: control target
= control target key end

     0   :  { %8 = vsyncpa [#allocation8], 0  ;;  %s1935_s0 = inlined_call_operand.vmem [shape: f32[2,8,128], index: 0, kind: input, shape index: {}]   ;;  %s1936_s1 = inlined_call_operand.vmem [shape: bf16[80,8], index: 1, kind: input, shape index: {}]   ;;  %s1937_s2 = inlined_call_operand.vmem [shape: bf16[8,32], index: 2, kind: input, shape index: {}]   ;;  %s1938_s3 = inlined_call_operand.hbm [shape: f32[2,8,128], index: 3, kind: output, shape index: {}]  }
   0x1   :  { %10 = vsyncpa [#allocation8 + $0x1], 0  ;;  %s1686_s12 = smov 0   ;;  %s1688_s13 = smov 0  }
   0x2   :  { %s1690_s14 = smov 0   ;;  %s1692_s15 = smov 0  }
   0x3   :  { %s1694_s16 = smov 0   ;;  %s1696_s17 = smov 0  }
   0x4 LB: > { %s1250_s2 = sadd.s32 4294967295, %s1661_s17   ;;  %s1251_s18 = sadd.s32 4294967294, %s1661_s17   ;;  %s1661_s17 = sphi %s1696_s17, %s16_s17   ;;  %s1657_s16 = sphi %s1694_s16, %s1945_s16   ;;  %s1653_s15 = sphi %s1692_s15, %s1944_s15   ;;  %s1649_s14 = sphi %s1690_s14, %s1943_s14   ;;  %s1645_s13 = sphi %s1688_s13, %s1942_s13   ;;  %s1641_s12 = sphi %s1686_s12, %s1941_s12  }
   0x5   : > { %s28_s19 = sadd.s32 1, %s1657_s16  ;;  %s79_s20 = sadd.s32 1, %s1649_s14 }
   0x6   : > { %p30_p0 = scmp.ge.s32.totalorder %s28_s19, 2  ;;  %p89_p1 = scmp.ne.s32.totalorder %s1649_s14, %s1645_s13 }
   0x7   : > { %p90_p2 = scmp.eq.s32.totalorder %s1250_s2, 1  ;;  %p95_p3 = scmp.ne.s32.totalorder %s1645_s13, %s1641_s12 }
   0x8   : > { %s1947_s19 = smov (%p30_p0, %s28_s19), 0  ;;  %p96_p5 = scmp.eq.s32.totalorder %s1251_s18, 1 }
   0x9   : > { %p1726_p4 = por %p90_p2, %p89_p1  ;;  %s74_s22 = ssub.s32 %s1657_s16, %s1947_s19 }
   0xa   : > { %p1253_p6 = scmp.ge.s32.totalorder %s1661_s17, 1  ;;  %p77_p7 = scmp.eq.s32.totalorder %s74_s22, 0 }
   0xb   : > { %p1733_p8 = por %p96_p5, %p95_p3  ;;  %p120_p9 = scmp.lt.s32.totalorder %s1661_s17, 3 }
   0xc   : > { %s1739_s24 = scalar_select %p77_p7, %s1649_s14, %s79_s20  }
   0xd   : > { %p121_p10 = pnand %p1253_p6, %p120_p9 }
   0xe   : > { %s134_s25 = sand.u32 (!%p121_p10), 1, %s1645_s13   ;;  %s1255_s26 = sshll.u32 (!%p121_p10), %s1653_s15, 3 }
   0xf   : > { %124 = sbr.rel (%p121_p10) target bundleno = 928 (0x3a0), region = 28  ;;  %s1745_s27 = sshll.u32 (!%p121_p10), %s134_s25, 3 }
  0x10   : > { %s143_s30 = scalar_lea.vmem (!%p121_p10), %s1935_s0, %s1255_s26  ;;  %s136_s4 = scalar_lea.vmem (!%p121_p10), [#allocation7], %s1745_s27 }
  0x14   : > { %v1750_v0 = vld [vmem:[%s143_s30] sm:$0xff] }
  0x15   : > { %186 = vsyncadd [#allocation6], 128 }
  0x16   : > { %1633 = dma.done.wait [#allocation6], 128 }
  0x17   : > { %1634 = vsyncadd [#allocation6], 4294967168  ;;  %v191_v1 = vrot.slane %v1750_v0, 4  ;;  %vm232_vm0 = vcmask 64512   ;;  %v1532_v5 = vld [vmem:[%s1936_s1 + $0x10] sm:$0xff]   ;;  %v1534_v7 = vld [vmem:[%s1936_s1] sm:$0xff]  }
  0x18   : > { %1386 = vmatprep.mubr.msk.bf16.mxu1 %vm232_vm0, %v1532_v5  ;;  %1380 = vmatprep.mubr.msk.bf16.mxu0 %vm232_vm0, %v1534_v7  ;;  %vm239_vm1 = vcmask 1043456   ;;  %v1533_v24 = vld [vmem:[%s1936_s1 + $0x18] sm:$0xff]   ;;  %v1535_v25 = vld [vmem:[%s1936_s1 + $0x8] sm:$0xff]   ;;  %v1663_v36 = vmov 0.0   ;;  %v1540_v39 = vld [vmem:[%s1936_s1 + $0x20] sm:$0xff]   ;;  %vm1664_vm2 = vmmov 0  }
  0x19   : > { %v192_v2 = vadd.f32 %v191_v1, %v1750_v0  ;;  %vm493_vm3 = vcmask 130048   ;;  %s1295_s22 = sshll.u32 %s1653_s15, 7  ;;  %s1175_s26 = sshll.u32 %s136_s4, 4  ;;  %s1176_s26 = int_to_ptr.vmem [resolvable:$true] %s1175_s26 }
  0x1a   : > { %s1173_s30 = scalar_lea.hbm %s1938_s3, %s1295_s22  ;;  %s1161_s5 = scalar_lea.sflag [#allocation8], %s134_s25 }
  0x1b   : > { %v193_v3 = vrot.slane %v192_v2, 2  ;;  %s1583_s6 = scalar_lea.vmem %s1176_s26, 128  ;;  %s1665_s15 = smov [#allocation7]  }
  0x1c   : > { %p1584_p11 = scmp.ne.s32.totalorder %s1176_s26, %s1583_s6  ;;  %s1587_s7 = sshll.u32 %s1665_s15, 4  ;;  %s1588_s7 = int_to_ptr.vmem [resolvable:$false] %s1587_s7 }
  0x1d   : > { %v194_v4 = vadd.f32 %v193_v3, %v192_v2  ;;  %s1589_s8 = scalar_lea.vmem %s1588_s7, 256  ;;  %p1590_p0 = scmp.lt.s32.totalorder %s1176_s26, %s1588_s7 }
  0x1e   : > { %p1585_p12 = pnand %p1584_p11, %p1726_p4  ;;  %p1591_p1 = scmp.lt.s32.totalorder %s1589_s8, %s1583_s6 }
  0x1f   : > { %v195_v6 = vrot.slane %v194_v4, 1 }
  0x20   : > { %p1586_p13 = pneg %p1585_p12  ;;  %p1592_p2 = por %p1591_p1, %p1590_p0 }
  0x21   : > { %v196_v8 = vadd.f32 %v195_v6, %v194_v4 }
  0x22   : > { %p1593_p3 = pnand %p1592_p2, %p1586_p13 }
  0x23   : > { %v198_v9 = vmul.f32 0.125, %v196_v8 }
  0x25   : > { %v199_v10 = vsub.f32 %v1750_v0, %v198_v9 }
  0x27   : > { %v200_v11 = vmul.f32 %v199_v10, %v199_v10 }
  0x29   : > { %v201_v12 = vrot.slane %v200_v11, 4 }
  0x2b   : > { %v202_v13 = vadd.f32 %v201_v12, %v200_v11 }
  0x2d   : > { %v203_v14 = vrot.slane %v202_v13, 2 }
  0x2f   : > { %v204_v15 = vadd.f32 %v203_v14, %v202_v13 }
  0x31   : > { %v205_v16 = vrot.slane %v204_v15, 1 }
  0x33   : > { %v206_v17 = vadd.f32 %v205_v16, %v204_v15 }
  0x35   : > { %v207_v18 = vmul.f32 0.125, %v206_v17 }
  0x37   : > { %v208_v19 = vadd.f32 1e-05, %v207_v18 }
  0x39   : > { %1541 = vrsqrt.f32 %v208_v19 }
  0x46   : > { %v1542_v20 = vpop.eup %1541 }
  0x47   : > { %v210_v21 = vmul.f32 %v1542_v20, %v199_v10 }
  0x49   : > { %v211_v22 = vpack.c.bf16 %v210_v21, %v210_v21 }
  0x4b   : > { %1473 = vmatprep.subr.msk.bf16.mxu1 %vm239_vm1, %v211_v22  ;;  %v241_v23 = vsel %vm239_vm1, %v211_v22, 0  ;;  %1472 = vmatprep.subr.msk.bf16.mxu0 %vm239_vm1, %v211_v22 }
  0x4c   : > { %1385 = vmatpush3.bf16.msra.mxu1 %v241_v23  ;;  %1379 = vmatpush3.bf16.msra.mxu0 %v241_v23 }
  0x4d   : > { %1390 = vmatprep.subr.bf16.mxu0 %v1663_v36 }
  0x4f   : > { %1387 = vmatmul.mubr.msk.bf16.vlgmr.msra.gmra.mxu1 %vm232_vm0, %v1533_v24  ;;  %1381 = vmatmul.mubr.msk.bf16.vlgmr.msra.gmra.mxu0 %vm232_vm0, %v1535_v25 }
  0x50   : > { %1391 = vmatpush3.bf16.msra.mxu0 %v241_v23  ;;  %1392 = vmatprep.mubr.msk.bf16.mxu0 %vm1664_vm2, %v1663_v36 }
  0x57   : > { %1393 = vmatmul.mubr.msk.bf16.vlgmr.msra.gmra.mxu0 %vm232_vm0, %v1540_v39 }
 0x10f   : > { %v1388_v26 = vpop.f32.mrf.mxu1  ;;  %v1382_v27 = vpop.f32.mrf.mxu0 }
 0x111   : > { %v362_v28 = vpop.f32.mrf.mxu1  ;;  %v277_v29 = vpop.f32.mrf.mxu0 }
 0x113   : > { %v1389_v30 = vpop.f32.mrf.mxu1  ;;  %v1383_v31 = vpop.f32.mrf.mxu0 }
 0x114   : > { %v1325_v32 = vpack.c.bf16 %v1389_v30, %v1388_v26  ;;  %v1315_v33 = vpack.c.bf16 %v1383_v31, %v1382_v27 }
 0x115   : > { %v365_v34 = vpop.f32.mrf.mxu1  ;;  %v280_v35 = vpop.f32.mrf.mxu0 }
 0x116   : > { %1333 = vst [vmem:[#allocation4 + $0x8] sm:$0xff] %v1325_v32   ;;  %v1320_v37 = vpack.c.bf16 %v365_v34, %v362_v28  ;;  %1332 = vst [vmem:[#allocation3 + $0x8] sm:$0xff] %v1315_v33   ;;  %v1310_v38 = vpack.c.bf16 %v280_v35, %v277_v29 }
 0x117   : > { %v439_v56 = vpop.f32.mrf.mxu0 }
 0x118   : > { %1321 = vst [vmem:[#allocation4] sm:$0xff] %v1320_v37   ;;  %1311 = vst [vmem:[#allocation3] sm:$0xff] %v1310_v38  }
 0x119   : > { %v1394_v57 = vpop.f32.mrf.mxu0 }
 0x11b   : > { %v442_v58 = vpop.f32.mrf.mxu0 }
 0x11c   : > { %v1330_v60 = vpack.c.bf16 %v442_v58, %v439_v56 }
 0x11d   : > { %v1539_v40 = vld [vmem:[#allocation3 + $0x8] sm:$0xff]   ;;  %v1537_v43 = vld [vmem:[#allocation4 + $0x8] sm:$0xff]   ;;  %v1395_v59 = vpop.f32.mrf.mxu0 }
 0x11e   : > { %1414 = vmatprep.subr.bf16.mxu0 %v1539_v40  ;;  %1331 = vst [vmem:[#allocation5] sm:$0xff] %v1330_v60  }
 0x11f   : > { %v1536_v41 = vld [vmem:[#allocation4] sm:$0xff]   ;;  %v1538_v42 = vld [vmem:[#allocation3] sm:$0xff]   ;;  %1415 = vmatpush3.bf16.msra.mxu0 %v1539_v40 }
 0x120   : > { %471 = vxpose.xlu0.c.b16.start.end [1/1] (short) %v1536_v41, 128  ;;  %1396 = vmatprep.subr.bf16.mxu1 %v1538_v42 }
 0x121   : > { %1452 = vmatprep.subr.bf16.mxu0 %v1663_v36  ;;  %1397 = vmatpush3.bf16.msra.mxu1 %v1538_v42 }
 0x122   : > { %1432 = vmatprep.subr.bf16.mxu1 %v1663_v36 }
 0x13d   : > { %621 = vxpose.xlu0.c.b16.start.end [1/1] (short) %v1537_v43, 128 }
 0x182   : > { %v479_v44 = vpop.trf.xlu0 }
 0x183   : > { %1398 = vmatprep.mubr.msk.bf16.mxu1 %vm493_vm3, %v479_v44 }
 0x186   : > { %v480_v45 = vpop.trf.xlu0 }
 0x187   : > { %1399 = vmatmul.mubr.msk.bf16.vlgmr.msra.gmra.mxu1 %vm493_vm3, %v480_v45 }
 0x18a   : > { %v481_v46 = vpop.trf.xlu0 }
 0x18b   : > { %1402 = vmatprep.mubr.msk.bf16.mxu1 %vm493_vm3, %v481_v46 }
 0x18e   : > { %v482_v47 = vpop.trf.xlu0 }
 0x18f   : > { %1403 = vmatmul.mubr.msk.bf16.gmra.mxu1 %vm493_vm3, %v482_v47 }
 0x192   : > { %v483_v48 = vpop.trf.xlu0 }
 0x193   : > { %1406 = vmatprep.mubr.msk.bf16.mxu1 %vm493_vm3, %v483_v48 }
 0x196   : > { %v484_v49 = vpop.trf.xlu0 }
 0x197   : > { %1407 = vmatmul.mubr.msk.bf16.gmra.mxu1 %vm493_vm3, %v484_v49 }
 0x19a   : > { %v485_v50 = vpop.trf.xlu0 }
 0x19b   : > { %1410 = vmatprep.mubr.msk.bf16.mxu1 %vm493_vm3, %v485_v50 }
 0x19e   : > { %v486_v51 = vpop.trf.xlu0 }
 0x19f   : > { %1411 = vmatmul.mubr.msk.bf16.gmra.mxu1 %vm493_vm3, %v486_v51 }
 0x1a0   : > { %1448 = vmatprep.mubr.msk.bf16.mxu1 %vm1664_vm2, %v1663_v36 }
 0x1a2   : > { %v629_v52 = vpop.trf.xlu0 }
 0x1a3   : > { %1416 = vmatprep.mubr.msk.bf16.mxu0 %vm493_vm3, %v629_v52 }
 0x1a6   : > { %v630_v53 = vpop.trf.xlu0 }
 0x1a7   : > { %1417 = vmatmul.mubr.msk.bf16.vlgmr.msra.gmra.mxu0 %vm493_vm3, %v630_v53 }
 0x1aa   : > { %v631_v54 = vpop.trf.xlu0 }
 0x1ab   : > { %1420 = vmatprep.mubr.msk.bf16.mxu0 %vm493_vm3, %v631_v54 }
 0x1ae   : > { %v632_v55 = vpop.trf.xlu0 }
 0x1af   : > { %1421 = vmatmul.mubr.msk.bf16.gmra.mxu0 %vm493_vm3, %v632_v55 }
 0x1b2   : > { %v633_v61 = vpop.trf.xlu0 }
 0x1b3   : > { %1424 = vmatprep.mubr.msk.bf16.mxu0 %vm493_vm3, %v633_v61 }
 0x1b6   : > { %v634_v62 = vpop.trf.xlu0 }
 0x1b7   : > { %1425 = vmatmul.mubr.msk.bf16.gmra.mxu0 %vm493_vm3, %v634_v62 }
 0x1ba   : > { %v635_v63 = vpop.trf.xlu0 }
 0x1bb   : > { %1428 = vmatprep.mubr.msk.bf16.mxu0 %vm493_vm3, %v635_v63 }
 0x1be   : > { %v636_v1 = vpop.trf.xlu0 }
 0x1bf   : > { %1429 = vmatmul.mubr.msk.bf16.gmra.mxu0 %vm493_vm3, %v636_v1 }
 0x1c0   : > { %1468 = vmatprep.mubr.msk.bf16.mxu0 %vm1664_vm2, %v1663_v36 }
 0x247   : > { %v1400_v2 = vpop.f32.mrf.mxu1 }
 0x249   : > { %v552_v3 = vpop.f32.mrf.mxu1 }
 0x24a   : > { %v861_v7 = vmax.f32 %v552_v3, %v1400_v2 }
 0x24b   : > { %v1401_v4 = vpop.f32.mrf.mxu1 }
 0x24d   : > { %v555_v5 = vpop.f32.mrf.mxu1 }
 0x24e   : > { %v862_v11 = vmax.f32 %v555_v5, %v1401_v4 }
 0x24f   : > { %v1801_v6 = vpop.f32.mrf.mxu1 }
 0x251   : > { %v568_v8 = vpop.f32.mrf.mxu1 }
 0x252   : > { %v863_v9 = vmax.f32 %v861_v7, %v568_v8 }
 0x253   : > { %v1803_v10 = vpop.f32.mrf.mxu1 }
 0x254   : > { %v865_v12 = vmax.f32 %v863_v9, %v1801_v6 }
 0x255   : > { %v571_v13 = vpop.f32.mrf.mxu1 }
 0x256   : > { %v867_v14 = vmax.f32 %v865_v12, -1e+30  ;;  %v864_v15 = vmax.f32 %v862_v11, %v571_v13 }
 0x257   : > { %v1408_v16 = vpop.f32.mrf.mxu1 }
 0x258   : > { %v869_v17 = vmax.f32 %v867_v14, -1e+30  ;;  %v866_v18 = vmax.f32 %v864_v15, %v1803_v10 }
 0x259   : > { %v584_v19 = vpop.f32.mrf.mxu1 }
 0x25a   : > { %v868_v20 = vmax.f32 %v866_v18, -1e+30  ;;  %v871_v22 = vmax.f32 %v869_v17, -1e+30 }
 0x25b   : > { %v1409_v21 = vpop.f32.mrf.mxu1 }
 0x25c   : > { %v870_v23 = vmax.f32 %v868_v20, -1e+30  ;;  %v873_v27 = vmax.f32 %v871_v22, -1e+30 }
 0x25d   : > { %v587_v24 = vpop.f32.mrf.mxu1 }
 0x25e   : > { %v872_v25 = vmax.f32 %v870_v23, -1e+30 }
 0x25f   : > { %v1412_v26 = vpop.f32.mrf.mxu1 }
 0x260   : > { %v874_v28 = vmax.f32 %v872_v25, -1e+30 }
 0x261   : > { %v600_v29 = vpop.f32.mrf.mxu1 }
 0x262   : > { %v875_v30 = vmax.f32 %v873_v27, %v874_v28 }
 0x263   : > { %v1413_v31 = vpop.f32.mrf.mxu1 }
 0x264   : > { %v876_v32 = vrot.slane %v875_v30, 4 }
 0x265   : > { %v603_v33 = vpop.f32.mrf.mxu1 }
 0x266   : > { %v877_v34 = vmax.f32 %v875_v30, %v876_v32 }
 0x267   : > { %v1807_v35 = vpop.f32.mrf.mxu0 }
 0x268   : > { %v878_v37 = vrot.slane %v877_v34, 2 }
 0x269   : > { %v1809_v38 = vpop.f32.mrf.mxu0 }
 0x26a   : > { %v879_v39 = vmax.f32 %v877_v34, %v878_v37  ;;  %v882_v46 = vmax.f32 %v1809_v38, %v1807_v35 }
 0x26b   : > { %v1811_v40 = vpop.f32.mrf.mxu0 }
 0x26c   : > { %v880_v41 = vrot.slane %v879_v39, 1 }
 0x26d   : > { %v1813_v42 = vpop.f32.mrf.mxu0 }
 0x26e   : > { %v881_v43 = vmax.f32 %v879_v39, %v880_v41  ;;  %v883_v59 = vmax.f32 %v1813_v42, %v1811_v40 }
 0x26f   : > { %v1815_v44 = vpop.f32.mrf.mxu0 }
 0x270   : > { %v903_v45 = vmax.f32 %v881_v43, -1e+30 }
 0x271   : > { %v1819_v47 = vpop.f32.mrf.mxu0 }
 0x272   : > { %v905_v48 = vsub.f32 %v552_v3, %v903_v45  ;;  %v906_v49 = vsub.f32 %v555_v5, %v903_v45  ;;  %v907_v50 = vsub.f32 %v1400_v2, %v903_v45  ;;  %v908_v51 = vsub.f32 %v1401_v4, %v903_v45 }
 0x273   : > { %v1821_v52 = vpop.f32.mrf.mxu0  ;;  %v884_v55 = vmax.f32 %v882_v46, %v1819_v47  ;;  %v909_v56 = vsub.f32 %v568_v8, %v903_v45  ;;  %v913_v61 = vsub.f32 -1e+30, %v903_v45  ;;  %v910_v62 = vsub.f32 %v571_v13, %v903_v45 }
 0x274   : > { %v937_v53 = vmul.f32 1.442695, %v905_v48  ;;  %v939_v54 = vmul.f32 1.442695, %v906_v49  ;;  %v941_v57 = vmul.f32 1.442695, %v907_v50  ;;  %v911_v2 = vsub.f32 %v1801_v6, %v903_v45 }
 0x275   : > { %v943_v58 = vmul.f32 1.442695, %v908_v51  ;;  %v1826_v60 = vpop.f32.mrf.mxu0  ;;  %v886_v63 = vmax.f32 %v884_v55, %v1815_v44  ;;  %v945_v3 = vmul.f32 1.442695, %v909_v56  ;;  %v953_v7 = vmul.f32 1.442695, %v913_v61 }
 0x276   : > { %1543 = vpow2.f32 %v937_v53  ;;  %v885_v1 = vmax.f32 %v883_v59, %v1826_v60  ;;  %v912_v8 = vsub.f32 %v1803_v10, %v903_v45  ;;  %v947_v9 = vmul.f32 1.442695, %v910_v62 }
 0x277   : > { %1545 = vpow2.f32 %v939_v54  ;;  %v888_v4 = vmax.f32 %v886_v63, -1e+30  ;;  %v949_v13 = vmul.f32 1.442695, %v911_v2 }
 0x278   : > { %1547 = vpow2.f32 %v941_v57  ;;  %v887_v5 = vmax.f32 %v885_v1, %v1821_v52  ;;  %v951_v16 = vmul.f32 1.442695, %v912_v8 }
 0x279   : > { %1549 = vpow2.f32 %v943_v58  ;;  %v890_v11 = vmax.f32 %v888_v4, -1e+30 }
 0x27a   : > { %v889_v12 = vmax.f32 %v887_v5, -1e+30  ;;  %1551 = vpow2.f32 %v945_v3 }
 0x27b   : > { %v892_v14 = vmax.f32 %v890_v11, -1e+30  ;;  %1553 = vpow2.f32 %v953_v7 }
 0x27c   : > { %v891_v15 = vmax.f32 %v889_v12, -1e+30  ;;  %1555 = vpow2.f32 %v947_v9 }
 0x27d   : > { %1557 = vpow2.f32 %v949_v13  ;;  %v894_v17 = vmax.f32 %v892_v14, -1e+30 }
 0x27e   : > { %v893_v6 = vmax.f32 %v891_v15, -1e+30  ;;  %1559 = vpow2.f32 %v951_v16 }
 0x280   : > { %v895_v18 = vmax.f32 %v893_v6, -1e+30 }
 0x282   : > { %v896_v20 = vmax.f32 %v894_v17, %v895_v18 }
 0x283   : > { %v1833_v19 = vpop.eup %1543 }
 0x284   : > { %v1835_v21 = vpop.eup %1545  ;;  %v897_v23 = vrot.slane %v896_v20, 4 }
 0x285   : > { %v1837_v10 = vpop.eup %1547  ;;  %v1009_v22 = vadd.f32 %v1835_v21, %v1833_v19  ;;  %v1053_v24 = vpack.c.bf16 %v1835_v21, %v1833_v19 }
 0x286   : > { %v1843_v25 = vpop.eup %1549  ;;  %v898_v27 = vmax.f32 %v896_v20, %v897_v23 }
 0x287   : > { %v1010_v26 = vadd.f32 %v1837_v10, %v1009_v22  ;;  %v1054_v28 = vpack.c.bf16 %v1843_v25, %v1837_v10  ;;  %v1552_v31 = vpop.eup %1551 }
 0x288   : > { %v899_v30 = vrot.slane %v898_v27, 2  ;;  %v1849_v32 = vpop.eup %1553 }
 0x289   : > { %v1011_v29 = vadd.f32 %v1843_v25, %v1010_v26  ;;  %v1556_v37 = vpop.eup %1555  ;;  %v1057_v39 = vpack.c.bf16 %v1849_v32, %v1849_v32 }
 0x28a   : > { %v900_v34 = vmax.f32 %v898_v27, %v899_v30  ;;  %v1558_v45 = vpop.eup %1557  ;;  %v1055_v11 = vpack.c.bf16 %v1556_v37, %v1552_v31 }
 0x28b   : > { %v1012_v33 = vadd.f32 %v1552_v31, %v1011_v29  ;;  %1433 = vmatpush3.bf16.msra.mxu1 %v1057_v39  ;;  %v1560_v49 = vpop.eup %1559 }
 0x28c   : > { %v901_v43 = vrot.slane %v900_v34, 1  ;;  %1434 = vmatprep.subr.bf16.mxu1 %v1663_v36  ;;  %v1056_v4 = vpack.c.bf16 %v1560_v49, %v1558_v45 }
 0x28d   : > { %v1013_v41 = vadd.f32 %v1556_v37, %v1012_v33  ;;  %v463_v33 = vld [vmem:[#allocation5] sm:$0xf]  ;;  %v1007_v37 = vmul.f32 0.0, %v1849_v32 }
 0x28e   : > { %v902_v48 = vmax.f32 %v900_v34, %v901_v43 }
 0x28f   : > { %v1014_v46 = vadd.f32 %v1558_v45, %v1013_v41  ;;  %1435 = vmatpush3.bf16.msra.mxu1 %v1057_v39 }
 0x290   : > { %v904_v51 = vmax.f32 %v902_v48, -1e+30  ;;  %1436 = vmatprep.subr.bf16.mxu1 %v1663_v36 }
 0x291   : > { %v1015_v50 = vadd.f32 %v1560_v49, %v1014_v46 }
 0x292   : > { %v921_v54 = vsub.f32 %v1809_v38, %v904_v51  ;;  %v922_v55 = vsub.f32 %v1813_v42, %v904_v51  ;;  %v923_v56 = vsub.f32 %v1807_v35, %v904_v51  ;;  %v924_v57 = vsub.f32 %v1811_v40, %v904_v51 }
 0x293   : > { %v1016_v53 = vadd.f32 %v1849_v32, %v1015_v50  ;;  %v925_v61 = vsub.f32 %v1819_v47, %v904_v51  ;;  %1437 = vmatpush3.bf16.msra.mxu1 %v1057_v39  ;;  %v929_v1 = vsub.f32 -1e+30, %v904_v51  ;;  %v926_v38 = vsub.f32 %v1826_v60, %v904_v51 }
 0x294   : > { %v969_v58 = vmul.f32 1.442695, %v921_v54  ;;  %v971_v59 = vmul.f32 1.442695, %v922_v55  ;;  %v973_v62 = vmul.f32 1.442695, %v923_v56  ;;  %1438 = vmatprep.subr.bf16.mxu1 %v1663_v36  ;;  %v927_v40 = vsub.f32 %v1815_v44, %v904_v51 }
 0x295   : > { %v1017_v63 = vadd.f32 %v1849_v32, %v1016_v53  ;;  %v975_v35 = vmul.f32 1.442695, %v924_v57  ;;  %v977_v2 = vmul.f32 1.442695, %v925_v61  ;;  %v985_v3 = vmul.f32 1.442695, %v929_v1 }
 0x296   : > { %1561 = vpow2.f32 %v969_v58  ;;  %v928_v5 = vsub.f32 %v1821_v52, %v904_v51  ;;  %v979_v7 = vmul.f32 1.442695, %v926_v38  ;;  %v981_v8 = vmul.f32 1.442695, %v927_v40 }
 0x297   : > { %1563 = vpow2.f32 %v971_v59  ;;  %v1018_v42 = vadd.f32 %v1849_v32, %v1017_v63  ;;  %1439 = vmatpush3.bf16.msra.mxu1 %v1057_v39  ;;  %v464_v63 = vld [vmem:[#allocation5 + $0x4] sm:$0xf] }
 0x298   : > { %1565 = vpow2.f32 %v973_v62  ;;  %1440 = vmatprep.subr.bf16.mxu1 %v1663_v36  ;;  %v983_v9 = vmul.f32 1.442695, %v928_v5 }
 0x299   : > { %v1019_v47 = vadd.f32 %v1849_v32, %v1018_v42  ;;  %1567 = vpow2.f32 %v975_v35  ;;  %v1426_v42 = vpop.f32.mrf.mxu0 }
 0x29a   : > { %1569 = vpow2.f32 %v977_v2 }
 0x29b   : > { %v1020_v60 = vadd.f32 %v1849_v32, %v1019_v47  ;;  %1441 = vmatpush3.bf16.msra.mxu1 %v1056_v4  ;;  %1571 = vpow2.f32 %v985_v3  ;;  %v733_v40 = vpop.f32.mrf.mxu0 }
 0x29c   : > { %1442 = vmatprep.subr.bf16.mxu1 %v1663_v36  ;;  %1573 = vpow2.f32 %v979_v7 }
 0x29d   : > { %v1021_v44 = vadd.f32 %v1849_v32, %v1020_v60  ;;  %1575 = vpow2.f32 %v981_v8  ;;  %v1427_v2 = vpop.f32.mrf.mxu0 }
 0x29e   : > { %1577 = vpow2.f32 %v983_v9 }
 0x29f   : > { %v1022_v12 = vadd.f32 %v1849_v32, %v1021_v44  ;;  %1443 = vmatpush3.bf16.msra.mxu1 %v1055_v11  ;;  %v736_v47 = vpop.f32.mrf.mxu0 }
 0x2a0   : > { %1444 = vmatprep.subr.bf16.mxu1 %v1663_v36 }
 0x2a1   : > { %v1023_v52 = vadd.f32 %v1849_v32, %v1022_v12  ;;  %v1430_v3 = vpop.f32.mrf.mxu0 }
 0x2a3   : > { %v1562_v13 = vpop.eup %1561  ;;  %v1024_v14 = vrot.slane %v1023_v52, 4  ;;  %1445 = vmatpush3.bf16.msra.mxu1 %v1054_v28  ;;  %v749_v4 = vpop.f32.mrf.mxu0 }
 0x2a4   : > { %v1564_v15 = vpop.eup %1563  ;;  %1446 = vmatprep.subr.bf16.mxu1 %v1663_v36 }
 0x2a5   : > { %v1030_v16 = vadd.f32 %v1564_v15, %v1562_v13  ;;  %v1061_v6 = vpack.c.bf16 %v1564_v15, %v1562_v13  ;;  %v1025_v17 = vadd.f32 %v1024_v14, %v1023_v52  ;;  %v1566_v18 = vpop.eup %1565  ;;  %v1431_v5 = vpop.f32.mrf.mxu0 }
 0x2a6   : > { %v1568_v23 = vpop.eup %1567 }
 0x2a7   : > { %v1031_v20 = vadd.f32 %v1566_v18, %v1030_v16  ;;  %v1026_v22 = vrot.slane %v1025_v17, 2  ;;  %1447 = vmatpush3.bf16.msra.mxu1 %v1053_v24  ;;  %v1570_v29 = vpop.eup %1569  ;;  %v1062_v57 = vpack.c.bf16 %v1568_v23, %v1566_v18  ;;  %v752_v7 = vpop.f32.mrf.mxu0 }
 0x2a8   : > { %v1572_v30 = vpop.eup %1571 }
 0x2a9   : > { %v1032_v26 = vadd.f32 %v1568_v23, %v1031_v20  ;;  %v1027_v27 = vadd.f32 %v1026_v22, %v1025_v17  ;;  %v1574_v25 = vpop.eup %1573  ;;  %v1065_v28 = vpack.c.bf16 %v1572_v30, %v1572_v30  ;;  %v1008_v1 = vmul.f32 0.0, %v1572_v30 }
 0x2aa   : > { %1449 = vmatmul.mubr.bf16.vlgmr.msra.gmra.mxu1 %v463_v33  ;;  %v1576_v41 = vpop.eup %1575  ;;  %v1063_v54 = vpack.c.bf16 %v1574_v25, %v1570_v29 }
 0x2ab   : > { %v1033_v31 = vadd.f32 %v1570_v29, %v1032_v26  ;;  %v1028_v10 = vrot.slane %v1027_v27, 1  ;;  %1453 = vmatpush3.bf16.msra.mxu0 %v1065_v28  ;;  %v1578_v21 = vpop.eup %1577 }
 0x2ac   : > { %1454 = vmatprep.subr.bf16.mxu0 %v1663_v36  ;;  %v1064_v50 = vpack.c.bf16 %v1578_v21, %v1576_v41 }
 0x2ad   : > { %v1034_v34 = vadd.f32 %v1574_v25, %v1033_v31  ;;  %v1029_v39 = vadd.f32 %v1028_v10, %v1027_v27 }
 0x2af   : > { %v1035_v43 = vadd.f32 %v1576_v41, %v1034_v34  ;;  %v1051_v19 = vadd.f32 %v1029_v39, %v1007_v37  ;;  %1455 = vmatpush3.bf16.msra.mxu0 %v1065_v28 }
 0x2b0   : > { %1456 = vmatprep.subr.bf16.mxu0 %v1663_v36 }
 0x2b1   : > { %v1036_v24 = vadd.f32 %v1578_v21, %v1035_v43  ;;  %1579 = vrcp.f32 %v1051_v19 }
 0x2b3   : > { %v1037_v45 = vadd.f32 %v1572_v30, %v1036_v24  ;;  %1457 = vmatpush3.bf16.msra.mxu0 %v1065_v28 }
 0x2b4   : > { %1458 = vmatprep.subr.bf16.mxu0 %v1663_v36 }
 0x2b5   : > { %v1038_v46 = vadd.f32 %v1572_v30, %v1037_v45 }
 0x2b7   : > { %v1039_v48 = vadd.f32 %v1572_v30, %v1038_v46  ;;  %1459 = vmatpush3.bf16.msra.mxu0 %v1065_v28 }
 0x2b8   : > { %1460 = vmatprep.subr.bf16.mxu0 %v1663_v36 }
 0x2b9   : > { %v1040_v49 = vadd.f32 %v1572_v30, %v1039_v48 }
 0x2bb   : > { %v1041_v32 = vadd.f32 %v1572_v30, %v1040_v49  ;;  %1461 = vmatpush3.bf16.msra.mxu0 %v1064_v50 }
 0x2bc   : > { %1462 = vmatprep.subr.bf16.mxu0 %v1663_v36 }
 0x2bd   : > { %v1042_v51 = vadd.f32 %v1572_v30, %v1041_v32 }
 0x2be   : > { %v1580_v8 = vpop.eup %1579 }
 0x2bf   : > { %v1043_v53 = vadd.f32 %v1572_v30, %v1042_v51  ;;  %1463 = vmatpush3.bf16.msra.mxu0 %v1063_v54 }
 0x2c0   : > { %1464 = vmatprep.subr.bf16.mxu0 %v1663_v36 }
 0x2c1   : > { %v1044_v55 = vadd.f32 %v1572_v30, %v1043_v53 }
 0x2c3   : > { %v1045_v56 = vrot.slane %v1044_v55, 4  ;;  %1465 = vmatpush3.bf16.msra.mxu0 %v1062_v57 }
 0x2c4   : > { %1466 = vmatprep.subr.bf16.mxu0 %v1663_v36 }
 0x2c5   : > { %v1046_v58 = vadd.f32 %v1045_v56, %v1044_v55 }
 0x2c7   : > { %v1047_v59 = vrot.slane %v1046_v58, 2  ;;  %1467 = vmatpush3.bf16.msra.mxu0 %v1061_v6 }
 0x2c9   : > { %v1048_v61 = vadd.f32 %v1047_v59, %v1046_v58 }
 0x2ca   : > { %1469 = vmatmul.mubr.bf16.vlgmr.msra.gmra.mxu0 %v464_v63 }
 0x2cb   : > { %v1049_v62 = vrot.slane %v1048_v61, 1 }
 0x2cd   : > { %v1050_v38 = vadd.f32 %v1049_v62, %v1048_v61 }
 0x2cf   : > { %v1052_v35 = vadd.f32 %v1050_v38, %v1008_v1 }
 0x2d1   : > { %1581 = vrcp.f32 %v1052_v35 }
 0x2de   : > { %v1582_v14 = vpop.eup %1581 }
 0x36a   : > { %v1103_v36 = vpop.f32.mrf.mxu1 }
 0x36b   : > { %v1149_v60 = vadd.f32 %v1103_v36, %v1007_v37 }
 0x36c   : > { %v1450_v44 = vpop.f32.mrf.mxu1 }
 0x36d   : > { %v1153_v9 = vmul.f32 %v1580_v8, %v1149_v60 }
 0x36e   : > { %v1106_v11 = vpop.f32.mrf.mxu1 }
 0x370   : > { %v1451_v12 = vpop.f32.mrf.mxu1 }
 0x38a   : > { %v1143_v52 = vpop.f32.mrf.mxu0 }
 0x38b   : > { %v1150_v13 = vadd.f32 %v1143_v52, %v1008_v1 }
 0x38c   : > { %v1470_v15 = vpop.f32.mrf.mxu0 }
 0x38d   : > { %v1154_v16 = vmul.f32 %v1582_v14, %v1150_v13 }
 0x38e   : > { %v1146_v6 = vpop.f32.mrf.mxu0 }
 0x38f   : > { %v1155_v17 = vadd.f32 %v1154_v16, %v1153_v9 }
 0x390   : > { %v1471_v18 = vpop.f32.mrf.mxu0 }
 0x391   : > { %v1158_v20 = vadd.f32 %v1155_v17, %v1750_v0 }
 0x393   : > { %1159 = vst [vmem:[%s136_s4] sm:$0xff] %v1158_v20 }
 0x394   : > { %1596 = shalt.err (!%p1593_p3)
}
 0x395   : > { %s1597_s9 = scalar_lea.hbm %s1173_s30, 128  ;;  %s1601_s4 = scalar_lea.hbm %s1938_s3, 256 }
 0x396   : > { %p1598_p5 = scmp.ne.s32.totalorder %s1173_s30, %s1597_s9  ;;  %p1602_p9 = scmp.lt.s32.totalorder %s1173_s30, %s1938_s3 }
 0x397   : > { %p1603_p10 = scmp.lt.s32.totalorder %s1601_s4, %s1597_s9 }
 0x398   : > { %p1599_p6 = pnand %p1598_p5, %p1726_p4 }
 0x399   : > { %p1604_p11 = por %p1603_p10, %p1602_p9 }
 0x39a   : > { %p1600_p7 = pneg %p1599_p6 }
 0x39c   : > { %p1605_p12 = pnand %p1604_p11, %p1600_p7 }
 0x39e   : > { %1608 = shalt.err (!%p1605_p12)
}
 0x39f   : > { %1474 = dma.vmem_to_hbm [thread:$0]  (%p1726_p4), %s1176_s26, 128, %s1173_s30, %s1161_s5  }
 0x3a0 PF: > { %p1480_p13 = scmp.ge.s32.totalorder %s1661_s17, 2  ;;  %s1187_s2 = sand.u32 1, %s1641_s12  }
 0x3a1   : > { %s1188_s18 = scalar_lea.sflag [#allocation8], %s1187_s2 }
 0x3a2   : > { %p1477_p0 = pnand %p1480_p13, %p1733_p8 }
 0x3a4   : > { %p1478_p1 = pneg %p1477_p0 }
 0x3a6   : > { %1636 = dma.done.wait (%p1478_p1), %s1188_s18, 128  }
 0x3a7   : > { %1638 = vsyncadd (%p1478_p1), %s1188_s18, 4294967168  ;;  %s16_s17 = sadd.s32 1, %s1661_s17   ;;  %s1941_s12 = smov %s1645_s13 }
 0x3a8   : > { %p13_p2 = scmp.ge.s32.totalorder %s16_s17, 4   ;;  %s1942_s13 = smov %s1649_s14 }
 0x3a9   : > { %s1943_s14 = smov %s1739_s24  ;;  %s1944_s15 = smov %s1657_s16 }
 0x3aa   : > { %s1945_s16 = smov %s1947_s19  ;;  %15 = sbr.rel (!%p13_p2) target bundleno = 4 (0x4), region = 109 }
 0x3af   :  { %1193 = vsyncpa [#allocation8], 1 }
 0x3b0   :  { %1195 = vsyncpa [#allocation8 + $0x1], 1 }
 0x3b1   :  { %1196 = vsyncmov [#allocation6] }
 0x3b4   :  { %s1197_s21 = vpop.sfrf %1196 }
 0x3b5   :  { %p1298_p4 = scmp.ne.s32.totalorder %s1197_s21, 0 }
 0x3b7   :  { %1201 = shalt.err (%p1298_p4)  }

</bundles_post_ra>
